<compile_context>
chip_gen: v7x
topology: tpu7x:2x2x1
jax: 0.10.0
libtpu: 0.0.40
codegen_flags: <defaults>
</compile_context>

<pallas_src>
import numpy as np
import jax
import jax.numpy as jnp
from jax.experimental import pallas as pl
from jax.experimental.pallas import tpu as pltpu

LANE = 128
MAX_TILE_HW = 2048  # lane-axis tile cap; re-derived vs. VMEM below


def _proj_kernel(x_ref, w_ref, bias_ref, o_ref):
    # x_ref:    (1, Cin, T)   bf16 activations (T = spatial tile, lane axis)
    # w_ref:    (Cout, Cin)   bf16 conv weight with BN scale folded in
    # bias_ref: (Cout, 1)     f32  folded BN bias
    # o_ref:    (1, Cout, T)  f32  output tile
    y = jnp.dot(w_ref[...], x_ref[0], preferred_element_type=jnp.float32)
    y = y + bias_ref[...]                      # broadcast over lane axis (f32)
    o_ref[0] = jnp.maximum(y, 0.0)             # ReLU, lane-dense store


def conv1x1_bn_relu(x_nchw, w_oi, gamma, beta, running_mean, running_var,
                    eps=1e-5):
    """Fused 1x1 Conv (no bias) + BatchNorm2d (eval-mode) + ReLU via Pallas.

    x_nchw: (N, Cin, H, W); w_oi: (Cout, Cin) (PyTorch OIHW 1x1 weight squeezed).
    """
    # TODO(synk): train-mode BatchNorm (batch statistics) would need a second
    # reduction pass; eval-mode (running stats) semantics are implemented here.
    N, Cin, H, W = x_nchw.shape
    Cout = w_oi.shape[0]
    HW = H * W

    # Fold BN running statistics: scale -> weight, shift -> bias.
    inv_std = 1.0 / jnp.sqrt(running_var.astype(jnp.float32) + eps)
    scale = gamma.astype(jnp.float32) * inv_std                     # (Cout,)
    w_folded = (w_oi.astype(jnp.float32) * scale[:, None]).astype(jnp.bfloat16)
    bias = (beta.astype(jnp.float32)
            - running_mean.astype(jnp.float32) * scale).reshape(Cout, 1)

    # Spatial tiling: lane-dense tile (multiple of 128), pad HW to a multiple.
    tile_hw = min(MAX_TILE_HW, pl.cdiv(HW, LANE) * LANE)
    hw_pad = pl.cdiv(HW, tile_hw) * tile_hw
    num_tiles = hw_pad // tile_hw

    x = x_nchw.reshape(N, Cin, HW).astype(jnp.bfloat16)
    if hw_pad != HW:
        x = jnp.pad(x, ((0, 0), (0, 0), (0, hw_pad - HW)))

    # VMEM budget: double-buffered x/out tiles + resident weight/bias.
    x_tile_bytes = Cin * tile_hw * 2
    o_tile_bytes = Cout * tile_hw * 4
    needed = 2 * (x_tile_bytes + o_tile_bytes) + Cout * Cin * 2 + Cout * 4
    vmem_limit = int(min(max(2 * needed + (2 << 20), 16 << 20), 48 << 20))

    cost = pl.CostEstimate(
        flops=2 * N * HW * Cin * Cout,
        transcendentals=0,
        bytes_accessed=(N * Cin * hw_pad * 2        # x (bf16)
                        + Cout * Cin * 2            # w (bf16)
                        + N * Cout * hw_pad * 4))   # out (f32)

    out = pl.pallas_call(
        _proj_kernel,
        out_shape=jax.ShapeDtypeStruct((N, Cout, hw_pad), jnp.float32),
        grid_spec=pltpu.PrefetchScalarGridSpec(
            num_scalar_prefetch=0,
            grid=(N, num_tiles),
            in_specs=[
                pl.BlockSpec((1, Cin, tile_hw), lambda n, s: (n, 0, s)),
                pl.BlockSpec((Cout, Cin), lambda n, s: (0, 0)),
                pl.BlockSpec((Cout, 1), lambda n, s: (0, 0)),
            ],
            out_specs=pl.BlockSpec((1, Cout, tile_hw), lambda n, s: (n, 0, s)),
        ),
        compiler_params=pltpu.CompilerParams(
            dimension_semantics=("parallel", "parallel"),
            vmem_limit_bytes=vmem_limit),
        cost_estimate=cost,
    )(x, w_folded, bias)

    # Drop spatial padding and restore NCHW (cheap slice + reshape, no transpose).
    return out[:, :, :HW].reshape(N, Cout, H, W)


def toy_backbone(x):
    """Synthetic backbone returning (features, out, out_normed); plain JAX glue."""
    # x: (N, C, H, W)
    f0 = jnp.concatenate([x, -x], axis=1)                     # (N, 2C, H, W)
    N, C0, H, W = f0.shape
    pooled = f0.reshape(N, C0, H // 2, 2, W // 2, 2).mean(axis=(3, 5))
    f1 = jnp.concatenate([pooled, 0.5 * pooled], axis=1)      # (N, 4C, H/2, W/2)
    out = f1.mean(axis=(2, 3))                                # (N, 4C)
    out_normed = out / (jnp.linalg.norm(out, axis=1, keepdims=True) + 1e-12)
    return [f0, f1], out, out_normed


class PallasWrapper:
    """JAX/Pallas equivalent of the PyTorch `wrapper` module."""

    def __init__(self, backbone_fn, in_out_channels, mask=None):
        self.backbone = backbone_fn
        self.mask = np.ones(len(in_out_channels)) if mask is None else mask
        self.params = []
        key = jax.random.PRNGKey(42)
        for (cin, cout) in in_out_channels:
            key, kw = jax.random.split(key)
            # Conv2d(1x1, bias=False) weight: PyTorch (Cout, Cin, 1, 1) -> (Cout, Cin).
            w = (jax.random.normal(kw, (cout, cin), jnp.float32)
                 * (1.0 / np.sqrt(cin)))
            gamma = 1.0 + 0.01 * jnp.arange(cout, dtype=jnp.float32)
            beta = 0.01 * jnp.arange(cout, dtype=jnp.float32)
            running_mean = 0.001 * jnp.arange(cout, dtype=jnp.float32)
            running_var = 1.0 + 0.02 * jnp.arange(cout, dtype=jnp.float32)
            self.params.append((w, gamma, beta, running_mean, running_var))

    def __call__(self, x, is_feature=True):
        features, out, out_normed = self.backbone(x)
        features = list(features)
        for i in range(len(self.mask)):
            if self.mask[i] == 1:
                w, g, b, rm, rv = self.params[i]
                features[i] = conv1x1_bn_relu(features[i], w, g, b, rm, rv)
        return features, out, out_normed

    # MSE / CD feature losses (plain-JAX reductions over projected features).
    def feature_loss(self, features1, features2, loss_type="mse"):
        loss = 0.0
        for i in range(len(self.mask)):
            if self.mask[i] == 1:
                if loss_type == "cd":
                    s = features1[i].mean(axis=(2, 3))
                    t = features2[i].mean(axis=(2, 3))
                    f_loss = jnp.mean((s - t) ** 2)
                else:
                    f_loss = jnp.mean((features1[i] - features2[i]) ** 2)
                loss = loss + f_loss
        return loss


if __name__ == "__main__":
    key = jax.random.PRNGKey(0)
    x = jax.random.normal(key, (2, 4, 16, 16), jnp.float32)  # NCHW input

    # Backbone produces features with 8 and 16 channels; project to 16 and 32.
    in_out_channels = [(8, 16), (16, 32)]
    model = PallasWrapper(toy_backbone, in_out_channels)

    features, out, out_normed = model(x, is_feature=True)
    features = [jax.block_until_ready(f) for f in features]
    jax.block_until_ready(out)
    jax.block_until_ready(out_normed)

    # Basic shape / semantics sanity checks.
    assert features[0].shape == (2, 16, 16, 16)
    assert features[1].shape == (2, 32, 8, 8)
    assert out.shape == (2, 16)
    assert out_normed.shape == (2, 16)
    assert bool(jnp.all(features[0] >= 0.0)) and bool(jnp.all(features[1] >= 0.0))

    # Cross-check kernel vs. plain-JAX reference for the first projection.
    w, g, b, rm, rv = model.params[0]
    f0 = jnp.concatenate([x, -x], axis=1)
    scale = g / jnp.sqrt(rv + 1e-5)
    ref = jnp.einsum('oc,nchw->nohw', w, f0)
    ref = jnp.maximum(ref * scale[None, :, None, None]
                      + (b - rm * scale)[None, :, None, None], 0.0)
    assert bool(jnp.max(jnp.abs(ref - features[0])) < 5e-2)  # bf16 matmul tol

    # Exercise feature_loss path too (plain JAX).
    _ = jax.block_until_ready(model.feature_loss(features, features, "cd"))

    print("KERNEL_OK")
</pallas_src>

<mosaic_0001>
module attributes {stable_mosaic.version = 11 : i64} {
  func.func @_proj_kernel(%arg0: i32, %arg1: i32, %arg2: memref<1x8x256xbf16, #tpu.memory_space<vmem>>, %arg3: memref<16x8xbf16, #tpu.memory_space<vmem>>, %arg4: memref<16x1xf32, #tpu.memory_space<vmem>>, %arg5: memref<1x16x256xf32, #tpu.memory_space<vmem>>) attributes {dimension_semantics = [#tpu.dimension_semantics<parallel>, #tpu.dimension_semantics<parallel>], iteration_bounds = array<i64: 2, 1>, scalar_prefetch = 0 : i64, scratch_operands = 0 : i64, tpu.core_type = #tpu.core_type<tc>, window_params = [{transform_indices = @transform_0, window_bounds = array<i64: 1, 8, 256>}, {pipeline_mode = #tpu.pipeline_mode<synchronous>, transform_indices = @transform_1, window_bounds = array<i64: 16, 8>}, {pipeline_mode = #tpu.pipeline_mode<synchronous>, transform_indices = @transform_2, window_bounds = array<i64: 16, 1>}, {transform_indices = @transform_3, window_bounds = array<i64: 1, 16, 256>}]} {
    %c0 = arith.constant 0 : index
    %c0_0 = arith.constant 0 : index
    %0 = vector.load %arg3[%c0, %c0_0] : memref<16x8xbf16, #tpu.memory_space<vmem>>, vector<16x8xbf16>
    %c0_1 = arith.constant 0 : index
    %c0_2 = arith.constant 0 : index
    %c0_3 = arith.constant 0 : index
    %1 = vector.load %arg2[%c0_1, %c0_2, %c0_3] : memref<1x8x256xbf16, #tpu.memory_space<vmem>>, vector<1x8x256xbf16>
    %2 = vector.shape_cast %1 : vector<1x8x256xbf16> to vector<8x256xbf16>
    %cst = arith.constant dense<0.000000e+00> : vector<16x256xf32>
    %3 = tpu.matmul %0, %2, %cst {dimension_numbers = #tpu.dot_dimension_numbers<[1], [0], [0], [1], [0, 0, 1, 1], [], []>} : vector<16x8xbf16>, vector<8x256xbf16>, vector<16x256xf32> -> vector<16x256xf32>
    %c0_4 = arith.constant 0 : index
    %c0_5 = arith.constant 0 : index
    %4 = vector.load %arg4[%c0_4, %c0_5] : memref<16x1xf32, #tpu.memory_space<vmem>>, vector<16x1xf32>
    %5 = vector.broadcast %4 : vector<16x1xf32> to vector<16x256xf32>
    %6 = arith.addf %3, %5 : vector<16x256xf32>
    %cst_6 = arith.constant 0.000000e+00 : f32
    %7 = vector.broadcast %cst_6 : f32 to vector<16x256xf32>
    %8 = arith.maximumf %6, %7 : vector<16x256xf32>
    %c0_7 = arith.constant 0 : index
    %c0_8 = arith.constant 0 : index
    %c0_9 = arith.constant 0 : index
    %9 = vector.load %arg5[%c0_7, %c0_8, %c0_9] : memref<1x16x256xf32, #tpu.memory_space<vmem>>, vector<1x16x256xf32>
    %10 = vector.shape_cast %9 : vector<1x16x256xf32> to vector<16x256xf32>
    %11 = vector.shape_cast %8 : vector<16x256xf32> to vector<1x16x256xf32>
    tpu.vector_store %arg5[%c0_7, %c0_8, %c0_9], %11 {strides = array<i32>} : memref<1x16x256xf32, #tpu.memory_space<vmem>>, vector<1x16x256xf32>,
    return
  }
  func.func @transform_0(%arg0: i32, %arg1: i32) -> (i32, i32, i32) {
    %c0_i32 = arith.constant 0 : i32
    %c0_i32_0 = arith.constant 0 : i32
    return %arg0, %c0_i32, %arg1 : i32, i32, i32
  }
  func.func @transform_1(%arg0: i32, %arg1: i32) -> (i32, i32) {
    %c0_i32 = arith.constant 0 : i32
    %c0_i32_0 = arith.constant 0 : i32
    %c0_i32_1 = arith.constant 0 : i32
    return %c0_i32, %c0_i32_0 : i32, i32
  }
  func.func @transform_2(%arg0: i32, %arg1: i32) -> (i32, i32) {
    %c0_i32 = arith.constant 0 : i32
    %c0_i32_0 = arith.constant 0 : i32
    %c0_i32_1 = arith.constant 0 : i32
    return %c0_i32, %c0_i32_0 : i32, i32
  }
  func.func @transform_3(%arg0: i32, %arg1: i32) -> (i32, i32, i32) {
    %c0_i32 = arith.constant 0 : i32
    %c0_i32_0 = arith.constant 0 : i32
    return %arg0, %c0_i32, %arg1 : i32, i32, i32
  }
}

</mosaic_0001>

<bundles_post_ra>
// kernel: tpu_custom_call.1
= control target key start
LH: loop header
LB: loop body
LE: loop exit
PB: predicated region body
PF: predicated region fallthrough
CT: control target
= control target key end

     0   :  { %8 = vsyncpa [#allocation3], 0  ;;  %s693_s0 = inlined_call_operand.vmem [shape: bf16[2,8,256], index: 0, kind: input, shape index: {}]   ;;  %s694_s1 = inlined_call_operand.vmem [shape: bf16[16,8], index: 1, kind: input, shape index: {}]   ;;  %s695_s2 = inlined_call_operand.vmem [shape: f32[16,1], index: 2, kind: input, shape index: {}]   ;;  %s696_s3 = inlined_call_operand.hbm [shape: f32[2,16,256], index: 3, kind: output, shape index: {}]  }
   0x1   :  { %10 = vsyncpa [#allocation3 + $0x1], 0  ;;  %s569_s12 = smov 0   ;;  %s571_s13 = smov 0  }
   0x2   :  { %s573_s14 = smov 0   ;;  %s575_s15 = smov 0  }
   0x3   :  { %s577_s16 = smov 0   ;;  %s579_s17 = smov 0  }
   0x4 LB: > { %s383_s18 = sadd.s32 4294967295, %s543_s17   ;;  %s384_s19 = sadd.s32 4294967294, %s543_s17   ;;  %s543_s17 = sphi %s579_s17, %s16_s17   ;;  %s539_s16 = sphi %s577_s16, %s703_s16   ;;  %s535_s15 = sphi %s575_s15, %s702_s15   ;;  %s531_s14 = sphi %s573_s14, %s701_s14   ;;  %s527_s13 = sphi %s571_s13, %s700_s13   ;;  %s523_s12 = sphi %s569_s12, %s699_s12  }
   0x5   : > { %s28_s20 = sadd.s32 1, %s539_s16  ;;  %s107_s21 = sadd.s32 1, %s531_s14 }
   0x6   : > { %p30_p0 = scmp.ge.s32.totalorder %s28_s20, 2  ;;  %p117_p1 = scmp.ne.s32.totalorder %s531_s14, %s527_s13 }
   0x7   : > { %p118_p2 = scmp.eq.s32.totalorder %s383_s18, 1  ;;  %p123_p3 = scmp.ne.s32.totalorder %s527_s13, %s523_s12 }
   0x8   : > { %s705_s20 = smov (%p30_p0, %s28_s20), 0  ;;  %p124_p5 = scmp.eq.s32.totalorder %s384_s19, 1 }
   0x9   : > { %p609_p4 = por %p118_p2, %p117_p1  ;;  %s102_s23 = ssub.s32 %s539_s16, %s705_s20 }
   0xa   : > { %p387_p6 = scmp.ge.s32.totalorder %s543_s17, 1  ;;  %p105_p7 = scmp.eq.s32.totalorder %s102_s23, 0 }
   0xb   : > { %p616_p8 = por %p124_p5, %p123_p3  ;;  %p161_p9 = scmp.lt.s32.totalorder %s543_s17, 3 }
   0xc   : > { %s622_s25 = scalar_select %p105_p7, %s531_s14, %s107_s21  }
   0xd   : > { %p162_p10 = pnand %p387_p6, %p161_p9 }
   0xe   : > { %p190_p11 = scmp.lt.s32.totalorder (!%p162_p10), %s535_s15, 1  ;;  %v545_v0 = vmov (!%p162_p10), 0   ;;  %v204_v1 = vld [vmem:[%s695_s2] sm:$0xff] (!%p162_p10)  ;;  %v205_v2 = vld [vmem:[%s695_s2 + $0x8] sm:$0xff] (!%p162_p10)  ;;  %vm230_vm0 = vcmask (!%p162_p10), 1043456   ;;  %vm226_vm1 = vcmask (!%p162_p10), 64512  }
   0xf   : > { %165 = sbr.rel (%p162_p10) target bundleno = 267 (0x10b), region = 32  ;;  %269 = vmatprep.mubr.bf16.mxu0 (!%p162_p10), %v545_v0  ;;  %461 = vset.pattern.permute.xlu0 (!%p162_p10), %v545_v0  ;;  %v464_v7 = vld [vmem:[%s694_s1] sm:$0xff] (!%p162_p10)   ;;  %s186_s10 = sand.u32 (!%p162_p10), 1, %s527_s13  }
  0x10   : > { %208 = vperm.xlu0 (!%p162_p10), %461, %v204_v1   ;;  %s388_s11 = sshll.u32 (!%p162_p10), %s186_s10, 5  ;;  %s402_s21 = sshll.u32 (!%p162_p10), %s535_s15, 9 }
  0x11   : > { %s188_s18 = scalar_lea.vmem (!%p162_p10), [#allocation2], %s388_s11  ;;  %s645_s27 = scalar_lea.hbm (!%p162_p10), %s696_s3, %s402_s21 }
  0x12   : > { %s304_s19 = sshll.u32 (!%p162_p10), %s188_s18, 4  ;;  %s546_s29 = smov (!%p162_p10), [#allocation2]   ;;  %s640_s19 = int_to_ptr.vmem [resolvable:$true] %s304_s19 }
  0x13   : > { %s469_s30 = sshll.u32 (!%p162_p10), %s546_s29, 4  ;;  %s470_s30 = int_to_ptr.vmem [resolvable:$false] %s469_s30 }
  0x14   : > { %213 = vperm.xlu0 (!%p162_p10), %461, %v205_v2   ;;  %p472_p1 = scmp.lt.s32.totalorder (!%p162_p10), %s640_s19, %s470_s30 }
  0x16   : > { %s191_s28 = scalar_select %p190_p11, %s535_s15, 1 }
  0x17   : > { %s647_s15 = scalar_lea.sflag [#allocation3], %s186_s10 }
  0x18   : > { %s401_s4 = sshll.u32 %s191_s28, 3  ;;  %s465_s28 = scalar_lea.vmem %s640_s19, 512 }
  0x19   : > { %s197_s7 = scalar_lea.vmem %s693_s0, %s401_s4  ;;  %p466_p12 = scmp.ne.s32.totalorder %s640_s19, %s465_s28 }
  0x1a   : > { %v203_v3 = vld [vmem:[%s197_s7] sm:$0xff]  ;;  %s471_s4 = scalar_lea.vmem %s470_s30, 1024 }
  0x1b   : > { %v393_v4 = vcombine.high %v203_v3, %v203_v3  ;;  %v392_v5 = vcombine.low %v203_v3, %v203_v3  ;;  %p467_p13 = pnand %p466_p12, %p609_p4  ;;  %p473_p2 = scmp.lt.s32.totalorder %s471_s4, %s465_s28 }
  0x1d   : > { %394 = vmatprep.subr.msk.bf16.mxu0 %vm230_vm0, %v393_v4  ;;  %v232_v6 = vsel %vm230_vm0, %v392_v5, 0  ;;  %p468_p0 = pneg %p467_p13  ;;  %p474_p3 = por %p473_p2, %p472_p1 }
  0x1e   : > { %238 = vmatpush1.bf16.msra.mxu0 %v232_v6 }
  0x1f   : > { %p475_p5 = pnand %p474_p3, %p468_p0 }
  0x21   : > { %395 = vmatmul.mubr.msk.bf16.vlgmr.msra.gmra.mrb[0].mxu0 %vm226_vm1, %v464_v7 }
  0x8f   : > { %v209_v8 = vpop.permute.xlu0 %208 }
  0x93   : > { %v214_v12 = vpop.permute.xlu0 %213 }
  0xf4   : > { %v271_v9 = vpop.f32.mrb[0].mxu0 }
  0xf5   : > { %v272_v10 = vadd.f32 %v271_v9, %v209_v8  ;;  %v273_v11 = vpop.f32.mrb[1].mxu0 }
  0xf6   : > { %v274_v13 = vadd.f32 %v273_v11, %v209_v8  ;;  %v275_v14 = vpop.f32.mrb[2].mxu0 }
  0xf7   : > { %v280_v15 = vmax.f32 %v272_v10, 0.0  ;;  %v276_v16 = vadd.f32 %v275_v14, %v214_v12  ;;  %v277_v17 = vpop.f32.mrb[3].mxu0 }
  0xf8   : > { %v281_v18 = vmax.f32 %v274_v13, 0.0  ;;  %v278_v19 = vadd.f32 %v277_v17, %v214_v12 }
  0xf9   : > { %284 = vst [vmem:[%s188_s18] sm:$0xff] %v280_v15  ;;  %v282_v20 = vmax.f32 %v276_v16, 0.0 }
  0xfa   : > { %285 = vst [vmem:[%s188_s18 + $0x8] sm:$0xff] %v281_v18  ;;  %v283_v21 = vmax.f32 %v278_v19, 0.0 }
  0xfb   : > { %286 = vst [vmem:[%s188_s18 + $0x10] sm:$0xff] %v282_v20 }
  0xfc   : > { %287 = vst [vmem:[%s188_s18 + $0x18] sm:$0xff] %v283_v21 }
  0xfd   : > { %478 = shalt.err (!%p475_p5)
}
  0xfe   : > { %s479_s5 = scalar_lea.hbm %s645_s27, 512  ;;  %s483_s8 = scalar_lea.hbm %s696_s3, 1024 }
  0xff   : > { %p480_p6 = scmp.ne.s32.totalorder %s645_s27, %s479_s5  ;;  %p484_p10 = scmp.lt.u32.totalorder %s645_s27, %s696_s3 }
 0x100   : > { %p485_p11 = scmp.lt.u32.totalorder %s483_s8, %s479_s5  ;;  %p487_p13 = scmp.lt.u32.totalorder %s479_s5, %s645_s27 }
 0x101   : > { %p481_p7 = pnand %p480_p6, %p609_p4 }
 0x102   : > { %p486_p12 = por %p485_p11, %p484_p10 }
 0x103   : > { %p482_p9 = pneg %p481_p7 }
 0x104   : > { %p488_p0 = por %p487_p13, %p486_p12 }
 0x106   : > { %p489_p1 = pnand %p488_p0, %p482_p9 }
 0x108   : > { %492 = shalt.err (!%p489_p1)
}
 0x109   : > { %s547_s11 = smov 256   ;;  %s548_s18 = smov 16  }
 0x10a   : > { %403 = dma.vmem_to_hbm [thread:$0]  (%p609_p4), %s640_s19, 512, %s645_s27, %s647_s15, %s547_s11, %s547_s11, %s548_s18  }
 0x10b PF: > { %p409_p2 = scmp.ge.s32.totalorder %s543_s17, 2  ;;  %s319_s21 = sand.u32 1, %s523_s12  }
 0x10c   : > { %s320_s23 = scalar_lea.sflag [#allocation3], %s319_s21 }
 0x10d   : > { %p406_p3 = pnand %p409_p2, %p616_p8 }
 0x10f   : > { %518 = dma.done.wait (!%p406_p3), %s320_s23, 512  }
 0x110   : > { %520 = vsyncadd (!%p406_p3), %s320_s23, 4294966784  ;;  %s16_s17 = sadd.s32 1, %s543_s17   ;;  %s699_s12 = smov %s527_s13 }
 0x111   : > { %p13_p5 = scmp.ge.s32.totalorder %s16_s17, 4   ;;  %s700_s13 = smov %s531_s14 }
 0x112   : > { %s701_s14 = smov %s622_s25  ;;  %s702_s15 = smov %s539_s16 }
 0x113   : > { %s703_s16 = smov %s705_s20  ;;  %15 = sbr.rel (!%p13_p5) target bundleno = 4 (0x4), region = 67 }
 0x11a   :  { %325 = vsyncpa [#allocation3], 1 }
 0x11b   :  { %327 = vsyncpa [#allocation3 + $0x1], 1 }

</bundles_post_ra>
